<compile_context>
chip_gen: v7x
topology: tpu7x:2x2x1
jax: 0.10.0
libtpu: 0.0.40
codegen_flags: <defaults>
</compile_context>

<pallas_src>
import jax
import jax.numpy as jnp
from jax.experimental import pallas as pl
from jax.experimental.pallas import tpu as pltpu

LANE = 128
NEG_INF = -1e30


def disc2mean_kernel(ids_ref, hidden_ref, w_ref, b_ref, out_ref,
                     psum_ref, denom_ref):
    s = pl.program_id(1)

    @pl.when(s == 0)
    def _init():
        psum_ref[...] = jnp.zeros_like(psum_ref)
        denom_ref[...] = jnp.zeros_like(denom_ref)

    # Per-seq-tile accumulation: one compare + one mul + adds per element.
    mask = (ids_ref[...] != 0).astype(jnp.float32)            # (TB, TS)
    h = hidden_ref[...].astype(jnp.float32)                   # (TB, TS, E)
    psum_ref[...] += jnp.sum(h * mask[:, :, None], axis=1)    # (TB, E)
    denom_ref[...] += jnp.sum(mask, axis=1, keepdims=True)    # (TB, 1)

    @pl.when(s == pl.num_programs(1) - 1)
    def _finalize():
        pooled = psum_ref[...] / (denom_ref[...] + 1e-10)     # (TB, E)
        # W is pre-transposed to (E, Cpad) in the wrapper -> no in-kernel .T
        logits = jnp.dot(pooled, w_ref[...],
                         preferred_element_type=jnp.float32) + b_ref[...]
        m = jnp.max(logits, axis=-1, keepdims=True)
        shifted = logits - m
        lse = jnp.log(jnp.sum(jnp.exp(shifted), axis=-1, keepdims=True))
        out_ref[...] = shifted - lse                          # (TB, Cpad)


def _pick_seq_tile(S, TB, E, itemsize, budget_bytes):
    """Largest seq tile whose hidden block fits the per-block budget."""
    if TB * S * E * itemsize <= budget_bytes:
        return S
    for ts in (1024, 512, 256, 128):
        if S % ts == 0 and TB * ts * E * itemsize <= budget_bytes:
            return ts
    return S  # no nice divisor found; fall back to whole-S block


def discriminator2mean_forward(x_ids, hidden, W, b):
    """x_ids: (B, S) ints; hidden: (B, S, E); W: (C, E); b: (C,)."""
    B, S = x_ids.shape
    Bh, Sh, E = hidden.shape
    C, Ew = W.shape
    assert (B, S) == (Bh, Sh) and E == Ew

    # Batch tile: whole batch when small, else 8-row (sublane-aligned) tiles.
    TB = B if (B <= 8 or B % 8 != 0) else 8
    # Seq tile: keep a double-buffered hidden block around <=24 MiB total.
    TS = _pick_seq_tile(S, TB, E, jnp.dtype(hidden.dtype).itemsize,
                        budget_bytes=12 * 1024 * 1024)

    # Pad classes up to a full 128-lane tile: zero weight columns and a large
    # negative bias so the padded lanes never perturb the log-sum-exp.
    Cpad = LANE * pl.cdiv(C, LANE)
    Wt = jnp.zeros((E, Cpad), jnp.float32).at[:, :C].set(W.astype(jnp.float32).T)
    bpad = jnp.full((1, Cpad), NEG_INF, jnp.float32).at[0, :C].set(
        b.astype(jnp.float32))

    grid = (B // TB, S // TS)
    out = pl.pallas_call(
        disc2mean_kernel,
        out_shape=jax.ShapeDtypeStruct((B, Cpad), jnp.float32),
        grid_spec=pltpu.PrefetchScalarGridSpec(
            num_scalar_prefetch=0,
            grid=grid,
            in_specs=[
                pl.BlockSpec((TB, TS), lambda bi, si: (bi, si)),       # ids
                pl.BlockSpec((TB, TS, E), lambda bi, si: (bi, si, 0)),  # hidden
                pl.BlockSpec((E, Cpad), lambda bi, si: (0, 0)),         # W^T
                pl.BlockSpec((1, Cpad), lambda bi, si: (0, 0)),         # bias
            ],
            out_specs=pl.BlockSpec((TB, Cpad), lambda bi, si: (bi, 0)),
            scratch_shapes=[
                pltpu.VMEM((TB, E), jnp.float32),   # pooled running sum
                pltpu.VMEM((TB, 1), jnp.float32),   # token-count running sum
            ],
        ),
        compiler_params=pltpu.CompilerParams(
            dimension_semantics=("parallel", "arbitrary"),
            vmem_limit_bytes=48 * 1024 * 1024,
        ),
    )(x_ids.astype(jnp.int32), hidden, Wt, bpad)
    return out[:, :C]


def reference_forward(x_ids, hidden, W, b):
    mask = (x_ids != 0).astype(jnp.float32)
    pooled = jnp.sum(hidden.astype(jnp.float32) * mask[:, :, None], axis=1) / (
        jnp.sum(mask, axis=1, keepdims=True) + 1e-10)
    logits = pooled @ W.T + b
    return jax.nn.log_softmax(logits, axis=-1)


if __name__ == "__main__":
    B, S, E, C = 2, 8, 32, 5   # small shapes; embed_size=1024 in the original
    VOCAB = 16

    key = jax.random.PRNGKey(0)
    k_ids, k_emb, k_w, k_b = jax.random.split(key, 4)

    # token ids with explicit pad (0) positions to exercise the mask
    x_ids = jax.random.randint(k_ids, (B, S), 1, VOCAB, dtype=jnp.int32)
    x_ids = x_ids.at[0, -3:].set(0).at[1, -1:].set(0)

    # deterministic stand-in for the BART encoder output (glue, plain JAX)
    emb_table = jax.random.normal(k_emb, (VOCAB, E), dtype=jnp.float32) * 0.1
    hidden = emb_table[x_ids]                           # (B, S, E) f32

    # ClassificationHead params (torch.nn.Linear(embed_size, class_size))
    W = jax.random.normal(k_w, (C, E), dtype=jnp.float32) * 0.05
    b = jax.random.normal(k_b, (C,), dtype=jnp.float32) * 0.05

    # f32 hidden path (exact-ish match with the reference)
    out = discriminator2mean_forward(x_ids, hidden, W, b)
    out = jax.block_until_ready(out)
    ref = reference_forward(x_ids, hidden, W, b)
    assert out.shape == (B, C)
    assert jnp.allclose(out, ref, atol=1e-5, rtol=1e-5), (out, ref)

    # bf16 streaming path (half the HBM traffic; upcast inside the kernel)
    out_bf16 = discriminator2mean_forward(x_ids, hidden.astype(jnp.bfloat16), W, b)
    out_bf16 = jax.block_until_ready(out_bf16)
    assert out_bf16.shape == (B, C)
    assert bool(jnp.all(jnp.isfinite(out_bf16)))
    assert jnp.allclose(out_bf16, ref, atol=1e-1, rtol=1e-1)

    print("KERNEL_OK")
</pallas_src>

<mosaic_0001>
module attributes {stable_mosaic.version = 11 : i64} {
  func.func @disc2mean_kernel(%arg0: i32, %arg1: i32, %arg2: memref<2x8xi32, #tpu.memory_space<vmem>>, %arg3: memref<2x8x32xf32, #tpu.memory_space<vmem>>, %arg4: memref<32x128xf32, #tpu.memory_space<vmem>>, %arg5: memref<1x128xf32, #tpu.memory_space<vmem>>, %arg6: memref<2x128xf32, #tpu.memory_space<vmem>>, %arg7: memref<2x32xf32, #tpu.memory_space<vmem>>, %arg8: memref<2x1xf32, #tpu.memory_space<vmem>>) attributes {dimension_semantics = [#tpu.dimension_semantics<parallel>, #tpu.dimension_semantics<arbitrary>], iteration_bounds = array<i64: 1, 1>, scalar_prefetch = 0 : i64, scratch_operands = 2 : i64, tpu.core_type = #tpu.core_type<tc>, window_params = [{transform_indices = @transform_0, window_bounds = array<i64: 2, 8>}, {transform_indices = @transform_1, window_bounds = array<i64: 2, 8, 32>}, {pipeline_mode = #tpu.pipeline_mode<synchronous>, transform_indices = @transform_2, window_bounds = array<i64: 32, 128>}, {pipeline_mode = #tpu.pipeline_mode<synchronous>, transform_indices = @transform_3, window_bounds = array<i64: 1, 128>}, {transform_indices = @transform_4, window_bounds = array<i64: 2, 128>}]} {
    %c0_i32 = arith.constant 0 : i32
    %0 = arith.cmpi eq, %arg1, %c0_i32 : i32
    %1 = arith.extui %0 : i1 to i32
    %c0_i32_0 = arith.constant 0 : i32
    %2 = arith.cmpi ne, %1, %c0_i32_0 : i32
    scf.if %2 {
      %cst_17 = arith.constant 0.000000e+00 : f32
      %24 = vector.broadcast %cst_17 : f32 to vector<2x32xf32>
      %c0_18 = arith.constant 0 : index
      %c0_19 = arith.constant 0 : index
      %25 = vector.load %arg7[%c0_18, %c0_19] : memref<2x32xf32, #tpu.memory_space<vmem>>, vector<2x32xf32>
      tpu.vector_store %arg7[%c0_18, %c0_19], %24 {strides = array<i32>} : memref<2x32xf32, #tpu.memory_space<vmem>>, vector<2x32xf32>,
      %cst_20 = arith.constant 0.000000e+00 : f32
      %26 = vector.broadcast %cst_20 : f32 to vector<2x1xf32>
      %c0_21 = arith.constant 0 : index
      %c0_22 = arith.constant 0 : index
      %27 = vector.load %arg8[%c0_21, %c0_22] : memref<2x1xf32, #tpu.memory_space<vmem>>, vector<2x1xf32>
      tpu.vector_store %arg8[%c0_21, %c0_22], %26 {strides = array<i32>} : memref<2x1xf32, #tpu.memory_space<vmem>>, vector<2x1xf32>,
    } else {
    }
    %c0 = arith.constant 0 : index
    %c0_1 = arith.constant 0 : index
    %3 = vector.load %arg2[%c0, %c0_1] : memref<2x8xi32, #tpu.memory_space<vmem>>, vector<2x8xi32>
    %c0_i32_2 = arith.constant 0 : i32
    %4 = vector.broadcast %c0_i32_2 : i32 to vector<2x8xi32>
    %5 = arith.cmpi ne, %3, %4 : vector<2x8xi32>
    %6 = arith.extui %5 : vector<2x8xi1> to vector<2x8xi32>
    %7 = arith.sitofp %6 : vector<2x8xi32> to vector<2x8xf32>
    %c0_3 = arith.constant 0 : index
    %c0_4 = arith.constant 0 : index
    %c0_5 = arith.constant 0 : index
    %8 = vector.load %arg3[%c0_3, %c0_4, %c0_5] : memref<2x8x32xf32, #tpu.memory_space<vmem>>, vector<2x8x32xf32>
    %c0_6 = arith.constant 0 : index
    %c0_7 = arith.constant 0 : index
    %9 = vector.load %arg7[%c0_6, %c0_7] : memref<2x32xf32, #tpu.memory_space<vmem>>, vector<2x32xf32>
    %10 = vector.shape_cast %7 : vector<2x8xf32> to vector<2x8x1xf32>
    %11 = vector.broadcast %10 : vector<2x8x1xf32> to vector<2x8x32xf32>
    %12 = arith.mulf %8, %11 : vector<2x8x32xf32>
    %cst = arith.constant dense<0.000000e+00> : vector<2x32xf32>
    %13 = vector.multi_reduction <add>, %12, %cst [1] : vector<2x8x32xf32> to vector<2x32xf32>
    %14 = arith.addf %9, %13 : vector<2x32xf32>
    %c0_8 = arith.constant 0 : index
    %c0_9 = arith.constant 0 : index
    %15 = vector.load %arg7[%c0_8, %c0_9] : memref<2x32xf32, #tpu.memory_space<vmem>>, vector<2x32xf32>
    tpu.vector_store %arg7[%c0_8, %c0_9], %14 {strides = array<i32>} : memref<2x32xf32, #tpu.memory_space<vmem>>, vector<2x32xf32>,
    %c0_10 = arith.constant 0 : index
    %c0_11 = arith.constant 0 : index
    %16 = vector.load %arg8[%c0_10, %c0_11] : memref<2x1xf32, #tpu.memory_space<vmem>>, vector<2x1xf32>
    %cst_12 = arith.constant dense<0.000000e+00> : vector<2xf32>
    %17 = vector.multi_reduction <add>, %7, %cst_12 [1] : vector<2x8xf32> to vector<2xf32>
    %18 = vector.shape_cast %17 : vector<2xf32> to vector<2x1xf32>
    %19 = arith.addf %16, %18 : vector<2x1xf32>
    %c0_13 = arith.constant 0 : index
    %c0_14 = arith.constant 0 : index
    %20 = vector.load %arg8[%c0_13, %c0_14] : memref<2x1xf32, #tpu.memory_space<vmem>>, vector<2x1xf32>
    tpu.vector_store %arg8[%c0_13, %c0_14], %19 {strides = array<i32>} : memref<2x1xf32, #tpu.memory_space<vmem>>, vector<2x1xf32>,
    %c0_i32_15 = arith.constant 0 : i32
    %21 = arith.cmpi eq, %arg1, %c0_i32_15 : i32
    %22 = arith.extui %21 : i1 to i32
    %c0_i32_16 = arith.constant 0 : i32
    %23 = arith.cmpi ne, %22, %c0_i32_16 : i32
    scf.if %23 {
      %c0_17 = arith.constant 0 : index
      %c0_18 = arith.constant 0 : index
      %24 = vector.load %arg7[%c0_17, %c0_18] : memref<2x32xf32, #tpu.memory_space<vmem>>, vector<2x32xf32>
      %c0_19 = arith.constant 0 : index
      %c0_20 = arith.constant 0 : index
      %25 = vector.load %arg8[%c0_19, %c0_20] : memref<2x1xf32, #tpu.memory_space<vmem>>, vector<2x1xf32>
      %cst_21 = arith.constant 1.000000e-10 : f32
      %26 = vector.broadcast %cst_21 : f32 to vector<2x1xf32>
      %27 = arith.addf %25, %26 : vector<2x1xf32>
      %28 = vector.broadcast %27 : vector<2x1xf32> to vector<2x32xf32>
      %29 = arith.divf %24, %28 : vector<2x32xf32>
      %c0_22 = arith.constant 0 : index
      %c0_23 = arith.constant 0 : index
      %30 = vector.load %arg4[%c0_22, %c0_23] : memref<32x128xf32, #tpu.memory_space<vmem>>, vector<32x128xf32>
      %cst_24 = arith.constant dense<0.000000e+00> : vector<2x128xf32>
      %31 = tpu.matmul %29, %30, %cst_24 {dimension_numbers = #tpu.dot_dimension_numbers<[1], [0], [0], [1], [0, 0, 1, 1], [], []>} : vector<2x32xf32>, vector<32x128xf32>, vector<2x128xf32> -> vector<2x128xf32>
      %c0_25 = arith.constant 0 : index
      %c0_26 = arith.constant 0 : index
      %32 = vector.load %arg5[%c0_25, %c0_26] : memref<1x128xf32, #tpu.memory_space<vmem>>, vector<1x128xf32>
      %33 = vector.broadcast %32 : vector<1x128xf32> to vector<2x128xf32>
      %34 = arith.addf %31, %33 : vector<2x128xf32>
      %cst_27 = arith.constant dense<0xFF800000> : vector<2xf32>
      %35 = vector.multi_reduction <maximumf>, %34, %cst_27 [1] : vector<2x128xf32> to vector<2xf32>
      %36 = vector.shape_cast %35 : vector<2xf32> to vector<2x1xf32>
      %37 = vector.broadcast %36 : vector<2x1xf32> to vector<2x128xf32>
      %38 = arith.subf %34, %37 : vector<2x128xf32>
      %39 = math.exp %38 : vector<2x128xf32>
      %cst_28 = arith.constant dense<0.000000e+00> : vector<2xf32>
      %40 = vector.multi_reduction <add>, %39, %cst_28 [1] : vector<2x128xf32> to vector<2xf32>
      %41 = vector.shape_cast %40 : vector<2xf32> to vector<2x1xf32>
      %42 = math.log %41 : vector<2x1xf32>
      %43 = vector.broadcast %42 : vector<2x1xf32> to vector<2x128xf32>
      %44 = arith.subf %38, %43 : vector<2x128xf32>
      %c0_29 = arith.constant 0 : index
      %c0_30 = arith.constant 0 : index
      %45 = vector.load %arg6[%c0_29, %c0_30] : memref<2x128xf32, #tpu.memory_space<vmem>>, vector<2x128xf32>
      tpu.vector_store %arg6[%c0_29, %c0_30], %44 {strides = array<i32>} : memref<2x128xf32, #tpu.memory_space<vmem>>, vector<2x128xf32>,
    } else {
    }
    return
  }
  func.func @transform_0(%arg0: i32, %arg1: i32) -> (i32, i32) {
    %c0_i32 = arith.constant 0 : i32
    return %arg0, %arg1 : i32, i32
  }
  func.func @transform_1(%arg0: i32, %arg1: i32) -> (i32, i32, i32) {
    %c0_i32 = arith.constant 0 : i32
    %c0_i32_0 = arith.constant 0 : i32
    return %arg0, %arg1, %c0_i32 : i32, i32, i32
  }
  func.func @transform_2(%arg0: i32, %arg1: i32) -> (i32, i32) {
    %c0_i32 = arith.constant 0 : i32
    %c0_i32_0 = arith.constant 0 : i32
    %c0_i32_1 = arith.constant 0 : i32
    return %c0_i32, %c0_i32_0 : i32, i32
  }
  func.func @transform_3(%arg0: i32, %arg1: i32) -> (i32, i32) {
    %c0_i32 = arith.constant 0 : i32
    %c0_i32_0 = arith.constant 0 : i32
    %c0_i32_1 = arith.constant 0 : i32
    return %c0_i32, %c0_i32_0 : i32, i32
  }
  func.func @transform_4(%arg0: i32, %arg1: i32) -> (i32, i32) {
    %c0_i32 = arith.constant 0 : i32
    %c0_i32_0 = arith.constant 0 : i32
    return %arg0, %c0_i32 : i32, i32
  }
}

</mosaic_0001>

<bundles_post_ra>
// kernel: tpu_custom_call.1
= control target key start
LH: loop header
LB: loop body
LE: loop exit
PB: predicated region body
PF: predicated region fallthrough
CT: control target
= control target key end

     0   :  { %9 = vsyncpa [#allocation5], 0  ;;  %s482_s0 = inlined_call_operand.hbm [shape: s32[2,8], index: 0, kind: input, shape index: {}]   ;;  %s483_s1 = inlined_call_operand.hbm [shape: f32[2,8,32], index: 1, kind: input, shape index: {}]   ;;  %s484_s2 = inlined_call_operand.hbm [shape: f32[32,128], index: 2, kind: input, shape index: {}]   ;;  %s485_s3 = inlined_call_operand.vmem [shape: f32[1,128], index: 3, kind: input, shape index: {}]   ;;  %s486_s4 = inlined_call_operand.hbm [shape: f32[2,128], index: 4, kind: output, shape index: {}]  }
   0x1   :  { %10 = vsyncpa [#allocation8], 0 }
   0x2   :  { %11 = vsyncpa [#allocation6], 0  ;;  %s383_s15 = smov [#allocation7]   ;;  %s289_s19 = scalar_lea.hbm %s483_s1, 256 }
   0x3   :  { %s27_s16 = sshll.u32 %s383_s15, 4  ;;  %p290_p0 = scmp.ne.s32.totalorder %s483_s1, %s289_s19  ;;  %s28_s16 = int_to_ptr.vmem [resolvable:$true] %s27_s16 }
   0x4   :  { %p293_p1 = scmp.lt.u32.totalorder %s289_s19, %s483_s1 }
   0x6   :  { %p295_p2 = pnand %p293_p1, %p290_p0 }
   0x8   :  { %298 = shalt.err (!%p295_p2)
}
   0x9   :  { %s299_s24 = scalar_lea.vmem %s28_s16, 256  ;;  %p304_p4 = scmp.lt.s32.totalorder %s28_s16, %s28_s16 }
   0xa   :  { %p300_p3 = scmp.ne.s32.totalorder %s28_s16, %s299_s24  ;;  %p305_p5 = scmp.lt.s32.totalorder %s299_s24, %s299_s24 }
   0xc   :  { %p306_p6 = por %p305_p5, %p304_p4 }
   0xe   :  { %p307_p7 = pnand %p306_p6, %p300_p3 }
  0x10   :  { %310 = shalt.err (!%p307_p7)
}
  0x11   :  { %s384_s25 = smov 128   ;;  %s385_s26 = smov 8  }
  0x12   :  { %33 = dma.hbm_to_vmem [thread:$0]  %s483_s1, 256, %s28_s16, [#allocation8], %s384_s25, %s384_s25, %s385_s26  }
  0x13   :  { %s386_s29 = smov [#allocation4]   ;;  %s387_s5 = smov [#allocation9]  }
  0x14   :  { %s18_s30 = sshll.u32 %s386_s29, 4  ;;  %s39_s6 = sshll.u32 %s387_s5, 4  ;;  %s19_s30 = int_to_ptr.vmem [resolvable:$true] %s18_s30  ;;  %s40_s6 = int_to_ptr.vmem [resolvable:$true] %s39_s6 }
  0x15   :  { %s311_s9 = scalar_lea.hbm %s482_s0, 32 }
  0x16   :  { %p312_p8 = scmp.ne.s32.totalorder %s482_s0, %s311_s9  ;;  %p315_p9 = scmp.lt.u32.totalorder %s311_s9, %s482_s0 }
  0x18   :  { %p317_p10 = pnand %p315_p9, %p312_p8 }
  0x1a   :  { %320 = shalt.err (!%p317_p10)
}
  0x1b   :  { %s321_s1 = scalar_lea.vmem %s19_s30, 32  ;;  %p326_p12 = scmp.lt.s32.totalorder %s19_s30, %s19_s30 }
  0x1c   :  { %p322_p11 = scmp.ne.s32.totalorder %s19_s30, %s321_s1  ;;  %p327_p13 = scmp.lt.s32.totalorder %s321_s1, %s321_s1 }
  0x1e   :  { %p328_p0 = por %p327_p13, %p326_p12 }
  0x20   :  { %p329_p1 = pnand %p328_p0, %p322_p11 }
  0x22   :  { %332 = shalt.err (!%p329_p1)
}
  0x23   :  { %21 = dma.hbm_to_vmem [thread:$0]  %s482_s0, 32, %s19_s30, [#allocation5]  }
  0x24   :  { %s333_s18 = scalar_lea.hbm %s484_s2, 512 }
  0x25   :  { %p334_p2 = scmp.ne.s32.totalorder %s484_s2, %s333_s18  ;;  %p337_p3 = scmp.lt.u32.totalorder %s333_s18, %s484_s2 }
  0x27   :  { %p339_p4 = pnand %p337_p3, %p334_p2 }
  0x29   :  { %342 = shalt.err (!%p339_p4)
}
  0x2a   :  { %s343_s23 = scalar_lea.vmem %s40_s6, 512  ;;  %p348_p6 = scmp.lt.s32.totalorder %s40_s6, %s40_s6 }
  0x2b   :  { %p344_p5 = scmp.ne.s32.totalorder %s40_s6, %s343_s23  ;;  %p349_p7 = scmp.lt.s32.totalorder %s343_s23, %s343_s23 }
  0x2d   :  { %p350_p8 = por %p349_p7, %p348_p6 }
  0x2f   :  { %p351_p9 = pnand %p350_p8, %p344_p5 }
  0x31   :  { %354 = shalt.err (!%p351_p9)
}
  0x32   :  { %45 = dma.hbm_to_vmem [thread:$0]  %s484_s2, 512, %s40_s6, [#allocation8], %s384_s25, %s384_s25, %s385_s26  }
  0x33   :  { %377 = dma.done.wait [#allocation5], 32  }
  0x34   :  { %378 = vsyncadd [#allocation5], 4294967264 }
  0x35   :  { %379 = dma.done.wait [#allocation8], 768  }
  0x36   :  { %380 = vsyncadd [#allocation8], 4294966528  ;;  %vm61_vm0 = vcmask 254976   ;;  %vm63_vm1 = vcmask 1024   ;;  %v388_v0 = vmov 0.0   ;;  %vm112_vm2 = vcmask 58368  }
  0x37   :  { %62 = vst.msk [vmem:[#allocation2] sm:$0x3] %vm61_vm0, %v388_v0  ;;  %v65_v1 = vld [vmem:[#allocation4] sm:$0x3]  ;;  %v72_v4 = vlaneseq  ;;  %v389_v9 = vmov 0   ;;  %v70_v11 = vld [vmem:[#allocation7 + $0x8] sm:$0xff] }
  0x38   :  { %64 = vst.msk [vmem:[#allocation3] sm:$0x3] %vm63_vm1, %v388_v0  ;;  %vm66_vm3 = vcmp.ne.s32.totalorder %v65_v1, 0  ;;  %281 = vset.pattern.permute.xlu1 %v389_v9  ;;  %282 = vset.pattern.permute.xlu0 %v389_v9  ;;  %vm88_vm4 = vcmask 261120   ;;  %v69_v20 = vld [vmem:[#allocation7] sm:$0xff]  ;;  %v132_v32 = vld [vmem:[#allocation9] sm:$0xff] }
  0x39   :  { %v246_v2 = vsel %vm66_vm3, 1.0, %v388_v0  ;;  %v73_v5 = vshrl.u32 %v72_v4, 7  ;;  %v133_v33 = vld [vmem:[#allocation9 + $0x8] sm:$0xff]  ;;  %v134_v34 = vld [vmem:[#allocation9 + $0x10] sm:$0xff]  ;;  %v390_v36 = vmov 0.0|0.0   ;;  %v135_v38 = vld [vmem:[#allocation9 + $0x18] sm:$0xff] }
  0x3a   :  { %v113_v3 = vsel %vm112_vm2, %v246_v2, 0.0  ;;  %265 = vmatprep.subr.bf16.mxu0 %v390_v36  ;;  %v266_v37 = vpack.c.bf16 %v133_v33, %v132_v32  ;;  %vm391_vm5 = vmmov 0   ;;  %v269_v41 = vpack.c.bf16 %v135_v38, %v134_v34  ;;  %v247_v50 = vld [vmem:[%s485_s3] ss:$0 sm:$0xff]  ;;  %s392_s26 = smov [#allocation10]  }
  0x3b   :  { %114 = vadd.xlane.f32.xlu0 %v113_v3  ;;  %v81_v6 = vsub.s32 1, %v73_v5  ;;  %v74_v8 = vsub.s32 0, %v73_v5  ;;  %262 = vmatprep.mubr.msk.f32.mxu0 %vm391_vm5, %v388_v0  ;;  %vm105_vm6 = vcmask 1041409   ;;  %vm216_vm7 = vcmask 1041408   ;;  %s236_s27 = sshll.u32 %s392_s26, 4  ;;  %s237_s27 = int_to_ptr.vmem [resolvable:$true] %s236_s27 }
  0x3c   :  { %267 = vmatpush3.bf16.msra.mxu0 %v266_v37  ;;  %s355_s3 = scalar_lea.vmem %s237_s27, 32  ;;  %p360_p11 = scmp.lt.s32.totalorder %s237_s27, %s237_s27 }
  0x3d   :  { %v82_v7 = vrot.slane %v246_v2, %v81_v6  ;;  %v75_v10 = vrot.slane %v246_v2, %v74_v8  ;;  %268 = vmatprep.subr.bf16.mxu0 %v390_v36  ;;  %p356_p10 = scmp.ne.s32.totalorder %s237_s27, %s355_s3  ;;  %p361_p12 = scmp.lt.s32.totalorder %s355_s3, %s355_s3 }
  0x3e   :  { %v71_v42 = vld [vmem:[#allocation2] sm:$0x3] }
  0x3f   :  { %84 = vbcast.lane.b32.xlu1 %v82_v7, 256  ;;  %v111_v16 = vld [vmem:[#allocation3] sm:$0x3]  ;;  %p362_p13 = por %p361_p12, %p360_p11 }
  0x40   :  { %270 = vmatpush3.bf16.msra.mxu0 %v269_v41 }
  0x41   :  { %p363_p0 = pnand %p362_p13, %p356_p10 }
  0x51   :  { %77 = vbcast.lane.b32.xlu0 %v75_v10, 256 }
  0xb1   :  { %v85_v12 = vpop.permute.xlu1 %84 }
  0xb2   :  { %v87_v13 = vmul.f32 %v85_v12, %v70_v11 }
  0xb4   :  { %v96_v14 = vsel %vm88_vm4, %v87_v13, 0.0 }
  0xb5   :  { %v97_v15 = vrot.slane %v96_v14, 4 }
  0xb7   :  { %v98_v18 = vadd.f32 %v97_v15, %v96_v14 }
  0xb9   :  { %v99_v21 = vrot.slane %v98_v18, 2 }
  0xbb   :  { %v100_v25 = vadd.f32 %v99_v21, %v98_v18 }
  0xbd   :  { %v101_v30 = vrot.slane %v100_v25, 1 }
  0xbf   :  { %v102_v39 = vadd.f32 %v101_v30, %v100_v25 }
  0xc8   :  { %v115_v17 = vpop.xlane.xlu0 %114 }
  0xc9   :  { %v116_v19 = vadd.f32 %v115_v17, %v111_v16 }
  0xcb   :  { %118 = vst.msk [vmem:[#allocation3] sm:$0x3] %vm63_vm1, %v116_v19 }
  0xcc   :  { %v78_v22 = vpop.permute.xlu0 %77 }
  0xcd   :  { %v86_v23 = vmul.f32 %v78_v22, %v69_v20 }
  0xcf   :  { %v89_v24 = vsel %vm88_vm4, %v86_v23, 0.0 }
  0xd0   :  { %v90_v26 = vrot.slane %v89_v24, 4 }
  0xd2   :  { %v123_v27 = vld [vmem:[#allocation3] sm:$0x3]  ;;  %v91_v28 = vadd.f32 %v90_v26, %v89_v24 }
  0xd3   :  { %v124_v29 = vadd.f32 1e-10, %v123_v27 }
  0xd4   :  { %v92_v31 = vrot.slane %v91_v28, 2 }
  0xd5   :  { %127 = vperm.xlu1 %281, %v124_v29  }
  0xd6   :  { %v93_v35 = vadd.f32 %v92_v31, %v91_v28 }
  0xd8   :  { %v94_v40 = vrot.slane %v93_v35, 1 }
  0xda   :  { %v95_v43 = vadd.f32 %v94_v40, %v93_v35 }
  0xdc   :  { %v106_v44 = vsel %vm105_vm6, %v102_v39, %v95_v43 }
  0xdd   :  { %v108_v45 = vadd.f32 %v106_v44, %v71_v42 }
  0xdf   :  { %110 = vst.msk [vmem:[#allocation2] sm:$0x3] %vm61_vm0, %v108_v45 }
  0xe6   :  { %v122_v48 = vld [vmem:[#allocation2] sm:$0x3] }
 0x154   :  { %v128_v46 = vpop.permute.xlu1 %127 }
 0x155   :  { %283 = vrcp.f32 %v128_v46 }
 0x15f   :  { %v284_v47 = vpop.eup %283 }
 0x160   :  { %v131_v49 = vmul.f32 %v284_v47, %v122_v48 }
 0x162   :  { %263 = vmatmul.mubr.msk.f32.vlgmr.msra.gmra.mrb[0].mxu0 %vm88_vm4, %v131_v49 }
 0x235   :  { %v212_v51 = vpop.f32.mrb[0].mxu0 }
 0x236   :  { %v213_v52 = vadd.f32 %v247_v50, %v212_v51  ;;  %v264_v53 = vpop.f32.mrb[1].mxu0 }
 0x238   :  { %v217_v54 = vsel %vm216_vm7, %v213_v52, -inf }
 0x239   :  { %218 = vmax.xlane.f32.xlu1 %v217_v54 }
 0x2c6   :  { %v219_v55 = vpop.xlane.xlu1 %218 }
 0x2c7   :  { %v220_v56 = vsub.f32 %v213_v52, %v219_v55 }
 0x2c9   :  { %v221_v57 = vmul.f32 1.442695, %v220_v56 }
 0x2cb   :  { %285 = vpow2.f32 %v221_v57 }
 0x2d5   :  { %v286_v58 = vpop.eup %285 }
 0x2d6   :  { %v223_v59 = vsel %vm216_vm7, %v286_v58, 0.0 }
 0x2d7   :  { %224 = vadd.xlane.f32.xlu0 %v223_v59 }
 0x364   :  { %v225_v60 = vpop.xlane.xlu0 %224 }
 0x365   :  { %287 = vlog2.f32 %v225_v60 }
 0x36f   :  { %v288_v61 = vpop.eup %287 }
 0x370   :  { %v227_v62 = vmul.f32 0.6931472, %v288_v61 }
 0x372   :  { %v228_v63 = vsub.f32 %v220_v56, %v227_v62 }
 0x374   :  { %229 = vst [vmem:[#allocation10] sm:$0x3] %v228_v63 }
 0x375   :  { %366 = shalt.err (!%p363_p0)
}
 0x376   :  { %s367_s30 = scalar_lea.hbm %s486_s4, 32 }
 0x377   :  { %p368_p1 = scmp.ne.s32.totalorder %s486_s4, %s367_s30  ;;  %p371_p2 = scmp.lt.u32.totalorder %s367_s30, %s486_s4 }
 0x379   :  { %p373_p3 = pnand %p371_p2, %p368_p1 }
 0x37b   :  { %376 = shalt.err (!%p373_p3)
}
 0x37c   :  { %239 = dma.vmem_to_hbm [thread:$0]  %s237_s27, 32, %s486_s4, [#allocation6]  }
 0x37d   :  { %381 = dma.done.wait [#allocation6], 32  }
 0x37e   :  { %382 = vsyncadd [#allocation6], 4294967264 }
 0x37f   :  { %243 = vsyncpa [#allocation5], 1 }
 0x380   :  { %244 = vsyncpa [#allocation8], 1 }
 0x381   :  { %245 = vsyncpa [#allocation6], 1 }

</bundles_post_ra>
